<compile_context>
chip_gen: v7x
topology: tpu7x:2x2x1
jax: 0.10.0
libtpu: 0.0.40
codegen_flags: <defaults>
</compile_context>

<pallas_src>
import functools
import math

import jax
import jax.numpy as jnp
from jax import lax
from jax.experimental import pallas as pl
from jax.experimental.pallas import tpu as pltpu

_INV_SQRT2 = 1.0 / math.sqrt(2.0)


def _round_up(x, m):
    return ((x + m - 1) // m) * m


def _sublane_multiple(dtype):
    # Second-to-last-dim tiling requirement: f32 -> 8, bf16 -> 16, int8/fp8 -> 32.
    return max(8, 32 // jnp.dtype(dtype).itemsize)


def _vmem_limit_bytes():
    # Generation-aware cap: ~75% of physical VMEM (~96 MiB v5e/v6e, ~48 MiB v7x).
    try:
        cap = int(pltpu.get_tpu_info().vmem_capacity_bytes)
    except Exception:
        cap = 64 * 1024 * 1024
    return max(32 * 1024 * 1024, int(0.75 * cap))


def _const_block_spec(shape):
    """Grid-invariant block (weights / biases): single-buffered if supported."""
    idx = lambda i: (0,) * len(shape)
    try:
        return pl.BlockSpec(shape, idx, pipeline_mode=pl.Buffered(1))
    except TypeError:  # older BlockSpec signature without pipeline_mode
        return pl.BlockSpec(shape, idx)


def _mlp_kernel(x_ref, w1_ref, b1_ref, w2_ref, b2_ref, o_ref):
    # x_ref: (TM, F) f32     w1_ref: (F, Dh) bf16    b1_ref: (1, Dh) f32
    # w2_ref: (Dh, D) bf16   b2_ref: (1, D)  f32     o_ref: (TM, D)
    #
    # Operands fed to the MXU in bf16; f32 accumulation via preferred_element_type.
    x = x_ref[...].astype(w1_ref.dtype)

    # Linear 1 + bias (f32)
    h = jnp.dot(x, w1_ref[...], preferred_element_type=jnp.float32)
    h = h + b1_ref[...]

    # Exact GELU (erf-based, matches torch.nn.GELU() default), in f32.
    h = 0.5 * h * (1.0 + lax.erf(h * _INV_SQRT2))

    # Linear 2 + bias (bf16 operands, f32 accumulation)
    y = jnp.dot(h.astype(w2_ref.dtype), w2_ref[...],
                preferred_element_type=jnp.float32)
    y = y + b2_ref[...]

    o_ref[...] = y.astype(o_ref.dtype)


def target_embedding_forward(mix, w1, b1, w2, b2, *, tile_m=4096,
                             compute_dtype=jnp.bfloat16, lane_multiple=128):
    """mix: (..., F).  Returns (..., D) in mix.dtype.

    Weights stored as (in, out), i.e. transpose of torch's (out, in) layout,
    so the kernel computes x @ W.
    """
    F_in = mix.shape[-1]
    D = w1.shape[1]
    lead_shape = mix.shape[:-1]
    out_dtype = mix.dtype

    x = mix.reshape(-1, F_in)
    n = x.shape[0]

    # --- Pad only the HIDDEN dim to a lane multiple. Pad hidden units see
    # GELU(x@0 + 0) = 0 and hit zero rows of w2, contributing exactly nothing.
    # The output dim stays at D (masked stores for D<128 beat writing 2x bytes
    # plus a separate slice pass).
    Dh = max(lane_multiple, _round_up(D, lane_multiple))
    if Dh != D:
        w1 = jnp.pad(w1, ((0, 0), (0, Dh - D)))
        b1 = jnp.pad(b1, (0, Dh - D))
        w2 = jnp.pad(w2, ((0, Dh - D), (0, 0)))

    # --- Row tile: large (amortize per-step overhead) but keep >= 2 row blocks
    # when possible so both v7x TensorCores get work; rounded to the output
    # dtype's sublane multiple.  No wrapper-side row padding — Pallas masks the
    # ragged last block (rows are independent, OOB reads are dropped on store).
    sub = _sublane_multiple(out_dtype)
    tm_cap = max(sub, _round_up(pl.cdiv(n, 2), sub))
    tm = max(sub, _round_up(min(int(tile_m), tm_cap), sub))
    grid_m = pl.cdiv(n, tm)

    w1c = w1.astype(compute_dtype)
    w2c = w2.astype(compute_dtype)
    b1_2d = b1.reshape(1, Dh).astype(jnp.float32)
    b2_2d = b2.reshape(1, D).astype(jnp.float32)

    in_isz = jnp.dtype(mix.dtype).itemsize
    out_isz = jnp.dtype(out_dtype).itemsize
    cost = pl.CostEstimate(
        flops=2 * n * (F_in * Dh + Dh * D),
        transcendentals=n * Dh,
        bytes_accessed=(n * F_in * in_isz + n * D * out_isz
                        + w1c.size * w1c.dtype.itemsize
                        + w2c.size * w2c.dtype.itemsize
                        + (Dh + D) * 4),
    )

    out = pl.pallas_call(
        _mlp_kernel,
        out_shape=jax.ShapeDtypeStruct((n, D), out_dtype),
        grid_spec=pltpu.PrefetchScalarGridSpec(
            num_scalar_prefetch=0,
            grid=(grid_m,),
            in_specs=[
                pl.BlockSpec((tm, F_in), lambda i: (i, 0)),  # x row tile (pipelined)
                _const_block_spec((F_in, Dh)),               # w1 (resident, 1-buffered)
                _const_block_spec((1, Dh)),                  # b1
                _const_block_spec((Dh, D)),                  # w2 (resident, 1-buffered)
                _const_block_spec((1, D)),                   # b2
            ],
            out_specs=pl.BlockSpec((tm, D), lambda i: (i, 0)),
        ),
        compiler_params=pltpu.CompilerParams(
            dimension_semantics=("parallel",),   # shards row blocks across TCs (v7x)
            vmem_limit_bytes=_vmem_limit_bytes(),
        ),
        cost_estimate=cost,
    )(x, w1c, b1_2d, w2c, b2_2d)

    return out.reshape(*lead_shape, D)


def init_target_embedding_params(key, feature_channel_num, dim):
    """Deterministic init mimicking torch.nn.Linear defaults."""
    k1, k2, k3, k4 = jax.random.split(key, 4)

    bound1 = 1.0 / math.sqrt(feature_channel_num)
    # torch stores weight as (out, in); we keep (in, out) so the kernel does x @ W.
    w1 = jax.random.uniform(k1, (feature_channel_num, dim), jnp.float32,
                            -bound1, bound1)
    b1 = jax.random.uniform(k2, (dim,), jnp.float32, -bound1, bound1)

    bound2 = 1.0 / math.sqrt(dim)
    w2 = jax.random.uniform(k3, (dim, dim), jnp.float32, -bound2, bound2)
    b2 = jax.random.uniform(k4, (dim,), jnp.float32, -bound2, bound2)
    return w1, b1, w2, b2


def _reference(mix, w1, b1, w2, b2, compute_dtype=None):
    """Pure-JAX reference.  compute_dtype=None -> full f32; otherwise matches
    the kernel's mixed precision (bf16 operands, f32 accumulation)."""
    if compute_dtype is not None:
        xm, w1c, w2c = (mix.astype(compute_dtype), w1.astype(compute_dtype),
                        w2.astype(compute_dtype))
    else:
        xm, w1c, w2c = mix, w1, w2

    h = jnp.einsum('...f,fd->...d', xm, w1c,
                   preferred_element_type=jnp.float32) + b1
    h = 0.5 * h * (1.0 + lax.erf(h * _INV_SQRT2))

    hc = h.astype(compute_dtype) if compute_dtype is not None else h
    y = jnp.einsum('...d,de->...e', hc, w2c,
                   preferred_element_type=jnp.float32) + b2
    return y.astype(mix.dtype)


if __name__ == "__main__":
    key = jax.random.PRNGKey(0)
    k_in, k_par = jax.random.split(key)

    batch, seq = 2, 8
    feature_channel_num, dim = 32, 64

    mix = jax.random.normal(k_in, (batch, seq, feature_channel_num), jnp.float32)
    w1, b1, w2, b2 = init_target_embedding_params(k_par, feature_channel_num, dim)

    fwd = jax.jit(functools.partial(target_embedding_forward, tile_m=4096))
    out = fwd(mix, w1, b1, w2, b2)
    jax.block_until_ready(out)

    assert out.shape == (batch, seq, dim), out.shape

    # Tight check vs. matched-precision reference (validates kernel logic).
    ref_matched = _reference(mix, w1, b1, w2, b2, compute_dtype=jnp.bfloat16)
    assert jnp.allclose(out, ref_matched, atol=2e-3, rtol=2e-3), \
        "mismatch vs matched-precision JAX reference"

    # Loose check vs. full-f32 reference (validates forward semantics;
    # difference is only bf16 operand rounding on the MXU).
    ref_f32 = _reference(mix, w1, b1, w2, b2, compute_dtype=None)
    assert jnp.allclose(out, ref_f32, atol=5e-2, rtol=5e-2), \
        "mismatch vs f32 JAX reference"

    print("KERNEL_OK")
</pallas_src>

<mosaic_0001>
module attributes {stable_mosaic.version = 11 : i64} {
  func.func @_mlp_kernel(%arg0: i32, %arg1: memref<8x32xf32, #tpu.memory_space<vmem>>, %arg2: memref<32x128xbf16, #tpu.memory_space<vmem>>, %arg3: memref<1x128xf32, #tpu.memory_space<vmem>>, %arg4: memref<128x64xbf16, #tpu.memory_space<vmem>>, %arg5: memref<1x64xf32, #tpu.memory_space<vmem>>, %arg6: memref<8x64xf32, #tpu.memory_space<vmem>>) attributes {dimension_semantics = [#tpu.dimension_semantics<parallel>], iteration_bounds = array<i64: 2>, scalar_prefetch = 0 : i64, scratch_operands = 0 : i64, tpu.core_type = #tpu.core_type<tc>, window_params = [{transform_indices = @transform_0, window_bounds = array<i64: 8, 32>}, {pipeline_mode = #tpu.pipeline_mode<synchronous>, transform_indices = @transform_1, window_bounds = array<i64: 32, 128>}, {pipeline_mode = #tpu.pipeline_mode<synchronous>, transform_indices = @transform_2, window_bounds = array<i64: 1, 128>}, {pipeline_mode = #tpu.pipeline_mode<synchronous>, transform_indices = @transform_3, window_bounds = array<i64: 128, 64>}, {pipeline_mode = #tpu.pipeline_mode<synchronous>, transform_indices = @transform_4, window_bounds = array<i64: 1, 64>}, {transform_indices = @transform_5, window_bounds = array<i64: 8, 64>}]} {
    %c0 = arith.constant 0 : index
    %c0_0 = arith.constant 0 : index
    %0 = vector.load %arg1[%c0, %c0_0] : memref<8x32xf32, #tpu.memory_space<vmem>>, vector<8x32xf32>
    %1 = arith.truncf %0 : vector<8x32xf32> to vector<8x32xbf16>
    %c0_1 = arith.constant 0 : index
    %c0_2 = arith.constant 0 : index
    %2 = vector.load %arg2[%c0_1, %c0_2] : memref<32x128xbf16, #tpu.memory_space<vmem>>, vector<32x128xbf16>
    %cst = arith.constant dense<0.000000e+00> : vector<8x128xf32>
    %3 = tpu.matmul %1, %2, %cst {dimension_numbers = #tpu.dot_dimension_numbers<[1], [0], [0], [1], [0, 0, 1, 1], [], []>} : vector<8x32xbf16>, vector<32x128xbf16>, vector<8x128xf32> -> vector<8x128xf32>
    %c0_3 = arith.constant 0 : index
    %c0_4 = arith.constant 0 : index
    %4 = vector.load %arg3[%c0_3, %c0_4] : memref<1x128xf32, #tpu.memory_space<vmem>>, vector<1x128xf32>
    %5 = vector.broadcast %4 : vector<1x128xf32> to vector<8x128xf32>
    %6 = arith.addf %3, %5 : vector<8x128xf32>
    %cst_5 = arith.constant 5.000000e-01 : f32
    %7 = vector.broadcast %cst_5 : f32 to vector<8x128xf32>
    %8 = arith.mulf %7, %6 : vector<8x128xf32>
    %cst_6 = arith.constant 0.707106769 : f32
    %9 = vector.broadcast %cst_6 : f32 to vector<8x128xf32>
    %10 = arith.mulf %6, %9 : vector<8x128xf32>
    %11 = math.erf %10 : vector<8x128xf32>
    %cst_7 = arith.constant 1.000000e+00 : f32
    %12 = vector.broadcast %cst_7 : f32 to vector<8x128xf32>
    %13 = arith.addf %12, %11 : vector<8x128xf32>
    %14 = arith.mulf %8, %13 : vector<8x128xf32>
    %15 = arith.truncf %14 : vector<8x128xf32> to vector<8x128xbf16>
    %c0_8 = arith.constant 0 : index
    %c0_9 = arith.constant 0 : index
    %16 = vector.load %arg4[%c0_8, %c0_9] : memref<128x64xbf16, #tpu.memory_space<vmem>>, vector<128x64xbf16>
    %cst_10 = arith.constant dense<0.000000e+00> : vector<8x64xf32>
    %17 = tpu.matmul %15, %16, %cst_10 {dimension_numbers = #tpu.dot_dimension_numbers<[1], [0], [0], [1], [0, 0, 1, 1], [], []>} : vector<8x128xbf16>, vector<128x64xbf16>, vector<8x64xf32> -> vector<8x64xf32>
    %c0_11 = arith.constant 0 : index
    %c0_12 = arith.constant 0 : index
    %18 = vector.load %arg5[%c0_11, %c0_12] : memref<1x64xf32, #tpu.memory_space<vmem>>, vector<1x64xf32>
    %19 = vector.broadcast %18 : vector<1x64xf32> to vector<8x64xf32>
    %20 = arith.addf %17, %19 : vector<8x64xf32>
    %c0_13 = arith.constant 0 : index
    %c0_14 = arith.constant 0 : index
    %21 = vector.load %arg6[%c0_13, %c0_14] : memref<8x64xf32, #tpu.memory_space<vmem>>, vector<8x64xf32>
    tpu.vector_store %arg6[%c0_13, %c0_14], %20 {strides = array<i32>} : memref<8x64xf32, #tpu.memory_space<vmem>>, vector<8x64xf32>,
    return
  }
  func.func @transform_0(%arg0: i32) -> (i32, i32) {
    %c0_i32 = arith.constant 0 : i32
    %c0_i32_0 = arith.constant 0 : i32
    return %arg0, %c0_i32 : i32, i32
  }
  func.func @transform_1(%arg0: i32) -> (i32, i32) {
    %c0_i32 = arith.constant 0 : i32
    %c0_i32_0 = arith.constant 0 : i32
    %c0_i32_1 = arith.constant 0 : i32
    return %c0_i32, %c0_i32_0 : i32, i32
  }
  func.func @transform_2(%arg0: i32) -> (i32, i32) {
    %c0_i32 = arith.constant 0 : i32
    %c0_i32_0 = arith.constant 0 : i32
    %c0_i32_1 = arith.constant 0 : i32
    return %c0_i32, %c0_i32_0 : i32, i32
  }
  func.func @transform_3(%arg0: i32) -> (i32, i32) {
    %c0_i32 = arith.constant 0 : i32
    %c0_i32_0 = arith.constant 0 : i32
    %c0_i32_1 = arith.constant 0 : i32
    return %c0_i32, %c0_i32_0 : i32, i32
  }
  func.func @transform_4(%arg0: i32) -> (i32, i32) {
    %c0_i32 = arith.constant 0 : i32
    %c0_i32_0 = arith.constant 0 : i32
    %c0_i32_1 = arith.constant 0 : i32
    return %c0_i32, %c0_i32_0 : i32, i32
  }
  func.func @transform_5(%arg0: i32) -> (i32, i32) {
    %c0_i32 = arith.constant 0 : i32
    %c0_i32_0 = arith.constant 0 : i32
    return %arg0, %c0_i32 : i32, i32
  }
}

</mosaic_0001>

<bundles_post_ra>
// kernel: target_embedding_forward.1
= control target key start
LH: loop header
LB: loop body
LE: loop exit
PB: predicated region body
PF: predicated region fallthrough
CT: control target
= control target key end

     0   :  { %10 = vsyncpa [#allocation3], 0  ;;  %s831_s0 = inlined_call_operand.vmem [shape: f32[16,32], index: 0, kind: input, shape index: {}]   ;;  %s832_s1 = inlined_call_operand.vmem [shape: bf16[32,128], index: 1, kind: input, shape index: {}]   ;;  %s833_s2 = inlined_call_operand.vmem [shape: f32[1,128], index: 2, kind: input, shape index: {}]   ;;  %s834_s3 = inlined_call_operand.vmem [shape: bf16[128,64], index: 3, kind: input, shape index: {}]   ;;  %s835_s4 = inlined_call_operand.vmem [shape: f32[1,64], index: 4, kind: input, shape index: {}]   ;;  %s836_s5 = inlined_call_operand.hbm [shape: f32[16,64], index: 5, kind: output, shape index: {}]  }
   0x1   :  { %12 = vsyncpa [#allocation3 + $0x1], 0  ;;  %s695_s18 = smov 0   ;;  %s697_s19 = smov 0  }
   0x2   :  { %s699_s20 = smov 0   ;;  %s701_s21 = smov 0  }
   0x3 LB: > { %s716_s22 = sadd.s32 4294967295, %s660_s21   ;;  %s482_s23 = sadd.s32 4294967294, %s660_s21   ;;  %s660_s21 = sphi %s701_s21, %s842_s21   ;;  %s656_s20 = sphi %s699_s20, %s841_s20   ;;  %s652_s19 = sphi %s697_s19, %s840_s19   ;;  %s648_s18 = sphi %s695_s18, %s839_s18  }
   0x4   : > { %s720_s24 = sadd.s32 1, %s660_s21   ;;  %s135_s25 = sadd.s32 1, %s656_s20 }
   0x5   : > { %s132_s26 = ssub.s32 %s660_s21, %s720_s24  ;;  %p145_p0 = scmp.ne.s32.totalorder %s656_s20, %s652_s19 }
   0x6   : > { %p133_p1 = scmp.eq.s32.totalorder %s132_s26, 0  ;;  %p146_p2 = scmp.eq.s32.totalorder %s716_s22, 1 }
   0x7   : > { %p151_p3 = scmp.ne.s32.totalorder %s652_s19, %s648_s18  ;;  %p152_p4 = scmp.eq.s32.totalorder %s482_s23, 1 }
   0x8   : > { %s731_s27 = scalar_select %p133_p1, %s656_s20, %s135_s25  }
   0x9   : > { %p733_p5 = por %p146_p2, %p145_p0  ;;  %p737_p6 = por %p152_p4, %p151_p3 }
   0xa   : > { %p485_p7 = scmp.ge.s32.totalorder %s660_s21, 1  ;;  %p189_p8 = scmp.lt.s32.totalorder %s660_s21, 3 }
   0xc   : > { %p190_p9 = pnand %p485_p7, %p189_p8 }
   0xd   : > { %v586_v0 = vld [vmem:[%s832_s1] sm:$0xff] (!%p190_p9)   ;;  %v662_v1 = vmov (!%p190_p9), 0.0   ;;  %v587_v2 = vld [vmem:[%s832_s1 + $0x8] sm:$0xff] (!%p190_p9)   ;;  %vm663_vm0 = vmmov (!%p190_p9), 0   ;;  %p216_p10 = scmp.lt.s32.totalorder (!%p190_p9), %s716_s22, 1  ;;  %vm246_vm1 = vcmask (!%p190_p9), 261120  }
   0xe   : > { %193 = sbr.rel (%p190_p9) target bundleno = 489 (0x1e9), region = 40  ;;  %517 = vmatprep.subr.bf16.mxu0 (!%p190_p9), %v662_v1  ;;  %525 = vmatprep.subr.bf16.mxu1 (!%p190_p9), %v662_v1  ;;  %v588_v3 = vld [vmem:[%s834_s3] sm:$0xff] (!%p190_p9)   ;;  %v589_v4 = vld [vmem:[%s834_s3 + $0x8] sm:$0xff] (!%p190_p9)   ;;  %v590_v7 = vld [vmem:[%s834_s3 + $0x10] sm:$0xff] (!%p190_p9)   ;;  %s213_s16 = sand.u32 (!%p190_p9), 1, %s652_s19   ;;  %vm407_vm2 = vcmask (!%p190_p9), 523264  }
   0xf   : > { %518 = vmatpush3.bf16.msra.mxu0 (!%p190_p9), %v586_v0  ;;  %521 = vmatprep.mubr.msk.bf16.mxu0 (!%p190_p9), %vm663_vm0, %v662_v1  ;;  %v591_v8 = vld [vmem:[%s834_s3 + $0x18] sm:$0xff] (!%p190_p9)   ;;  %v592_v9 = vld [vmem:[%s834_s3 + $0x20] sm:$0xff] (!%p190_p9)   ;;  %v593_v10 = vld [vmem:[%s834_s3 + $0x28] sm:$0xff] (!%p190_p9)   ;;  %s502_s26 = sshll.u32 (!%p190_p9), %s716_s22, 7 }
  0x10   : > { %519 = vmatprep.subr.bf16.mxu0 (!%p190_p9), %v662_v1  ;;  %541 = vmatprep.mubr.msk.bf16.mxu1 (!%p190_p9), %vm663_vm0, %v662_v1  ;;  %v594_v11 = vld [vmem:[%s834_s3 + $0x30] sm:$0xff] (!%p190_p9)   ;;  %v595_v12 = vld [vmem:[%s834_s3 + $0x38] sm:$0xff] (!%p190_p9)   ;;  %v488_v13 = vld [vmem:[%s833_s2] ss:$0 sm:$0xff] (!%p190_p9)  ;;  %s789_s9 = scalar_lea.hbm (!%p190_p9), %s836_s5, %s502_s26 }
  0x11   : > { %526 = vmatpush3.bf16.msra.mxu1 (!%p190_p9), %v588_v3  ;;  %v492_v25 = vld [vmem:[%s835_s4] ss:$0 sm:$0xff] (!%p190_p9) }
  0x12   : > { %527 = vmatprep.subr.bf16.mxu1 (!%p190_p9), %v662_v1 }
  0x13   : > { %520 = vmatpush3.bf16.msra.mxu0 (!%p190_p9), %v587_v2 }
  0x15   : > { %s217_s11 = scalar_select %p216_p10, %s716_s22, 1  ;;  %528 = vmatpush3.bf16.msra.mxu1 %v589_v4 }
  0x16   : > { %529 = vmatprep.subr.bf16.mxu1 %v662_v1  ;;  %s410_s22 = scalar_lea.sflag [#allocation3], %s213_s16 }
  0x17   : > { %s487_s14 = sshll.u32 %s217_s11, 3  ;;  %s664_s11 = smov [#allocation2]  }
  0x18   : > { %s219_s17 = scalar_lea.vmem %s831_s0, %s487_s14  ;;  %s602_s12 = sshll.u32 %s664_s11, 4  ;;  %s603_s12 = int_to_ptr.vmem [resolvable:$false] %s602_s12 }
  0x19   : > { %v221_v5 = vld [vmem:[%s219_s17] sm:$0xff]  ;;  %530 = vmatpush3.bf16.msra.mxu1 %v590_v7  ;;  %s486_s17 = sshll.u32 %s213_s16, 3  ;;  %s604_s13 = scalar_lea.vmem %s603_s12, 256 }
  0x1a   : > { %v222_v6 = vpack.c.bf16 %v221_v5, %v221_v5  ;;  %531 = vmatprep.subr.bf16.mxu1 %v662_v1  ;;  %s215_s30 = scalar_lea.vmem [#allocation2], %s486_s17 }
  0x1b   : > { %s423_s6 = sshll.u32 %s215_s30, 4  ;;  %s791_s6 = int_to_ptr.vmem [resolvable:$true] %s423_s6 }
  0x1c   : > { %522 = vmatmul.mubr.msk.bf16.vlgmr.msra.gmra.mrb[0].mxu0 %vm246_vm1, %v222_v6  ;;  %s598_s10 = scalar_lea.vmem %s791_s6, 128  ;;  %p605_p0 = scmp.lt.s32.totalorder %s791_s6, %s603_s12 }
  0x1d   : > { %532 = vmatpush3.bf16.msra.mxu1 %v591_v8  ;;  %p599_p11 = scmp.ne.s32.totalorder %s791_s6, %s598_s10  ;;  %p606_p1 = scmp.lt.s32.totalorder %s604_s13, %s598_s10 }
  0x1e   : > { %533 = vmatprep.subr.bf16.mxu1 %v662_v1 }
  0x1f   : > { %p600_p12 = pnand %p599_p11, %p733_p5  ;;  %p607_p2 = por %p606_p1, %p605_p0 }
  0x21   : > { %534 = vmatpush3.bf16.msra.mxu1 %v592_v9  ;;  %p601_p13 = pneg %p600_p12 }
  0x22   : > { %535 = vmatprep.subr.bf16.mxu1 %v662_v1 }
  0x23   : > { %p608_p3 = pnand %p607_p2, %p601_p13 }
  0x25   : > { %536 = vmatpush3.bf16.msra.mxu1 %v593_v10 }
  0x26   : > { %537 = vmatprep.subr.bf16.mxu1 %v662_v1 }
  0x29   : > { %538 = vmatpush3.bf16.msra.mxu1 %v594_v11 }
  0x2a   : > { %539 = vmatprep.subr.bf16.mxu1 %v662_v1 }
  0x2d   : > { %540 = vmatpush3.bf16.msra.mxu1 %v595_v12 }
  0xef   : > { %v284_v14 = vpop.f32.mrb[0].mxu0 }
  0xf0   : > { %v285_v15 = vadd.f32 %v488_v13, %v284_v14  ;;  %v523_v16 = vpop.f32.mrb[1].mxu0 }
  0xf1   : > { %v287_v17 = vpop.f32.mrb[2].mxu0 }
  0xf2   : > { %v291_v18 = vmul.f32 0.70710677, %v285_v15  ;;  %v524_v19 = vpop.f32.mrb[3].mxu0  ;;  %v290_v21 = vmul.f32 0.5, %v285_v15 }
  0xf4   : > { %596 = verf.f32 %v291_v18 }
  0xfe   : > { %v597_v20 = vpop.eup %596 }
  0xff   : > { %v293_v22 = vadd.f32 1.0, %v597_v20 }
 0x101   : > { %v294_v23 = vmul.f32 %v293_v22, %v290_v21 }
 0x103   : > { %v295_v24 = vpack.c.bf16 %v294_v23, %v294_v23 }
 0x105   : > { %542 = vmatmul.mubr.bf16.vlgmr.msra.gmra.mrb[0].mxu1 %v295_v24 }
 0x1d8   : > { %v401_v26 = vpop.f32.mrb[0].mxu1 }
 0x1d9   : > { %v402_v27 = vadd.f32 %v492_v25, %v401_v26  ;;  %v543_v28 = vpop.f32.mrb[1].mxu1 }
 0x1da   : > { %v404_v29 = vpop.f32.mrb[2].mxu1 }
 0x1db   : > { %v544_v30 = vpop.f32.mrb[3].mxu1  ;;  %408 = vst.msk [vmem:[%s215_s30] sm:$0xff] %vm407_vm2, %v402_v27 }
 0x1dc   : > { %611 = shalt.err (!%p608_p3)
}
 0x1dd   : > { %s612_s14 = scalar_lea.hbm %s789_s9, 128  ;;  %s616_s17 = scalar_lea.hbm %s836_s5, 256 }
 0x1de   : > { %p613_p4 = scmp.ne.s32.totalorder %s789_s9, %s612_s14  ;;  %p617_p9 = scmp.lt.u32.totalorder %s789_s9, %s836_s5 }
 0x1df   : > { %p618_p10 = scmp.lt.u32.totalorder %s616_s17, %s612_s14  ;;  %p620_p12 = scmp.lt.u32.totalorder %s612_s14, %s789_s9 }
 0x1e0   : > { %p614_p7 = pnand %p613_p4, %p733_p5 }
 0x1e1   : > { %p619_p11 = por %p618_p10, %p617_p9 }
 0x1e2   : > { %p615_p8 = pneg %p614_p7 }
 0x1e3   : > { %p621_p13 = por %p620_p12, %p619_p11 }
 0x1e5   : > { %p622_p0 = pnand %p621_p13, %p615_p8 }
 0x1e7   : > { %625 = shalt.err (!%p622_p0)
}
 0x1e8   : > { %545 = dma.vmem_to_hbm [thread:$0]  (%p733_p5), %s791_s6, 128, %s789_s9, %s410_s22  }
 0x1e9 PF: > { %p551_p1 = scmp.ge.s32.totalorder %s660_s21, 2  ;;  %s435_s26 = sand.u32 1, %s648_s18  }
 0x1ea   : > { %s436_s30 = scalar_lea.sflag [#allocation3], %s435_s26 }
 0x1eb   : > { %p548_p2 = pnand %p551_p1, %p737_p6 }
 0x1ed   : > { %643 = dma.done.wait (!%p548_p2), %s436_s30, 128  }
 0x1ee   : > { %645 = vsyncadd (!%p548_p2), %s436_s30, 4294967168  ;;  %p15_p3 = scmp.ge.s32.totalorder %s720_s24, 4   ;;  %s839_s18 = smov %s652_s19 }
 0x1ef   : > { %s840_s19 = smov %s656_s20  ;;  %s841_s20 = smov %s731_s27 }
 0x1f0   : > { %s842_s21 = smov %s720_s24  ;;  %17 = sbr.rel (!%p15_p3) target bundleno = 3 (0x3), region = 75 }
 0x1f7   :  { %441 = vsyncpa [#allocation3], 1 }
 0x1f8   :  { %443 = vsyncpa [#allocation3 + $0x1], 1 }

</bundles_post_ra>
